<compile_context>
chip_gen: v7x
topology: tpu7x:2x2x1
jax: 0.10.0
libtpu: 0.0.40
codegen_flags: <defaults>
</compile_context>

<pallas_src>
import functools

import jax
import jax.numpy as jnp
from jax.experimental import pallas as pl
from jax.experimental.pallas import tpu as pltpu


def _round_up(x, m):
    return ((x + m - 1) // m) * m


def _mlp_residual_kernel(num_layers, x_ref, wr_ref, br_ref, *rest):
    """One batch tile of the full forward pass.

    rest = (w_0, b_0, ..., w_{L-1}, b_{L-1}, wo, bo, out_ref)
      x_ref : (TB, D_in_p)  compute dtype (f32 or bf16)
      w_*   : compute dtype, zero-padded to lane multiples
      b_*   : float32, shape (1, padded_out)
    """
    out_ref = rest[-1]
    wo_ref, bo_ref = rest[-3], rest[-2]
    layer_refs = rest[:-3]

    x = x_ref[...]
    compute_dtype = x.dtype

    # residual = residual_transform(x_flat)   (f32 accumulation on the MXU)
    residual = (
        jnp.dot(x, wr_ref[...], preferred_element_type=jnp.float32) + br_ref[...]
    )

    h = x
    for i in range(num_layers):
        w = layer_refs[2 * i][...]
        b = layer_refs[2 * i + 1][...]
        pre = jnp.dot(h, w, preferred_element_type=jnp.float32) + b
        # x.size() always equals residual.size() here (both (TB, hidden)), so
        # the PyTorch re-transform branch never fires with these dims.
        act = jnp.maximum(pre, 0.0) + residual      # ReLU + residual add (f32 VPU)
        residual = act                              # residual = x
        h = act.astype(compute_dtype)               # next MXU input

    logits = (
        jnp.dot(h, wo_ref[...], preferred_element_type=jnp.float32) + bo_ref[...]
    )
    out_ref[...] = logits.astype(out_ref.dtype)


@functools.partial(jax.jit, static_argnums=(2, 3))
def mlp_classifier_deep_residual(x_nchw, params, num_layers,
                                 compute_dtype=jnp.bfloat16):
    """x_nchw: (B, 3, h, w) float32.  params: dict of (in,out)-layout weights."""
    B = x_nchw.shape[0]
    x_flat = x_nchw.reshape(B, -1)                  # matches x.view(B, -1)
    D_in = x_flat.shape[1]
    H = params["w0"].shape[1]
    C = params["wo"].shape[1]

    # --- padded / tiled sizes (zero padding keeps numerics exact) ---
    D_in_p = _round_up(D_in, 128)
    H_p = _round_up(H, 128)
    C_p = _round_up(C, 128)
    if B <= 256:
        TB = _round_up(B, 8)
        B_p = TB
    else:
        TB = 256
        B_p = _round_up(B, TB)

    def pad2(a, rows, cols):
        return jnp.pad(a, ((0, rows - a.shape[0]), (0, cols - a.shape[1])))

    xp = pad2(x_flat, B_p, D_in_p).astype(compute_dtype)
    wr = pad2(params["wr"], D_in_p, H_p).astype(compute_dtype)
    br = pad2(params["br"], 1, H_p).astype(jnp.float32)
    wo = pad2(params["wo"], H_p, C_p).astype(compute_dtype)
    bo = pad2(params["bo"], 1, C_p).astype(jnp.float32)

    operands = [xp, wr, br]
    for i in range(num_layers):
        in_p = D_in_p if i == 0 else H_p
        operands.append(pad2(params[f"w{i}"], in_p, H_p).astype(compute_dtype))
        operands.append(pad2(params[f"b{i}"], 1, H_p).astype(jnp.float32))
    operands.append(wo)
    operands.append(bo)

    grid = (B_p // TB,)

    # x / out tiled over batch; weights & biases VMEM-resident (constant index).
    in_specs = [pl.BlockSpec((TB, D_in_p), lambda i: (i, 0))]
    in_specs += [pl.BlockSpec(a.shape, lambda i: (0, 0)) for a in operands[1:]]
    out_spec = pl.BlockSpec((TB, C_p), lambda i: (i, 0))

    # Cost estimate (advisory).
    flops = 2 * B_p * (2 * D_in_p * H_p + (num_layers - 1) * H_p * H_p + H_p * C_p)
    bytes_accessed = (
        sum(int(a.size) * a.dtype.itemsize for a in operands) + B_p * C_p * 4
    )
    cost = pl.CostEstimate(
        flops=flops, transcendentals=0, bytes_accessed=bytes_accessed
    )

    # VMEM budget: resident weights + double-buffered activation tiles.
    resident = sum(int(a.size) * a.dtype.itemsize for a in operands[1:])
    itemsize = jnp.dtype(compute_dtype).itemsize
    tiles = 2 * (TB * D_in_p * itemsize + TB * C_p * 4)
    vmem_limit = int(min(max(2 * (resident + tiles), 32 << 20), 64 << 20))

    kernel = functools.partial(_mlp_residual_kernel, num_layers)
    out_p = pl.pallas_call(
        kernel,
        out_shape=jax.ShapeDtypeStruct((B_p, C_p), jnp.float32),
        grid=grid,
        in_specs=in_specs,
        out_specs=out_spec,
        compiler_params=pltpu.CompilerParams(
            dimension_semantics=("parallel",),
            vmem_limit_bytes=vmem_limit,
        ),
        cost_estimate=cost,
    )(*operands)

    return out_p[:B, :C]


def init_params(key, input_dim, hidden_dim, num_classes, num_layers):
    """Deterministic init mimicking nn.Linear's U(-1/sqrt(fan_in), 1/sqrt(fan_in)).

    Weights are stored already transposed to (in, out); biases as (1, out).
    """
    params = {}

    def linear(key, fan_in, fan_out):
        kw, kb = jax.random.split(key)
        bound = 1.0 / jnp.sqrt(fan_in)
        w = jax.random.uniform(kw, (fan_in, fan_out), jnp.float32, -bound, bound)
        b = jax.random.uniform(kb, (1, fan_out), jnp.float32, -bound, bound)
        return w, b

    keys = jax.random.split(key, num_layers + 2)
    params["w0"], params["b0"] = linear(keys[0], input_dim, hidden_dim)
    for i in range(1, num_layers):
        params[f"w{i}"], params[f"b{i}"] = linear(keys[i], hidden_dim, hidden_dim)
    params["wo"], params["bo"] = linear(keys[num_layers], hidden_dim, num_classes)
    params["wr"], params["br"] = linear(keys[num_layers + 1], input_dim, hidden_dim)
    return params


def reference_forward(x_nchw, params, num_layers, compute_dtype=jnp.float32):
    """Pure-JAX reference mirroring the PyTorch module (optionally with the
    same bf16 matmul-input quantization the fast kernel path uses)."""
    x = x_nchw.reshape(x_nchw.shape[0], -1).astype(compute_dtype)
    residual = (
        jnp.dot(x, params["wr"].astype(compute_dtype),
                preferred_element_type=jnp.float32) + params["br"]
    )
    h = x
    for i in range(num_layers):
        pre = (
            jnp.dot(h, params[f"w{i}"].astype(compute_dtype),
                    preferred_element_type=jnp.float32) + params[f"b{i}"]
        )
        act = jnp.maximum(pre, 0.0) + residual
        residual = act
        h = act.astype(compute_dtype)
    return (
        jnp.dot(h, params["wo"].astype(compute_dtype),
                preferred_element_type=jnp.float32) + params["bo"]
    )


if __name__ == "__main__":
    # Small shapes consistent with the module's forward:
    # batch=2, channels=3 (input_dim = 3*h*w), spatial=16x16,
    # hidden_dim=32, num_classes=6, num_layers=3.
    B, C, Himg, Wimg = 2, 3, 16, 16
    hidden_dim, num_classes, num_layers = 32, 6, 3
    input_dim = C * Himg * Wimg

    key = jax.random.PRNGKey(0)
    kx, kp = jax.random.split(key)
    x = jax.random.normal(kx, (B, C, Himg, Wimg), jnp.float32)
    params = init_params(kp, input_dim, hidden_dim, num_classes, num_layers)

    # 1) Exact-semantics check: f32 compute path vs the pure-f32 reference
    #    (padding must be numerically transparent).
    ref_f32 = reference_forward(x, params, num_layers, compute_dtype=jnp.float32)
    logits_f32 = jax.block_until_ready(
        mlp_classifier_deep_residual(x, params, num_layers,
                                     compute_dtype=jnp.float32))
    assert logits_f32.shape == (B, num_classes)
    assert jnp.allclose(logits_f32, ref_f32, atol=1e-4, rtol=1e-4), \
        "f32 kernel mismatch vs reference"

    # 2) Fast path: bf16 matmul inputs, f32 accumulation, vs a reference that
    #    applies the same quantization (accumulation-order-only differences).
    ref_bf16 = reference_forward(x, params, num_layers, compute_dtype=jnp.bfloat16)
    logits_bf16 = jax.block_until_ready(
        mlp_classifier_deep_residual(x, params, num_layers,
                                     compute_dtype=jnp.bfloat16))
    assert logits_bf16.shape == (B, num_classes)
    assert jnp.allclose(logits_bf16, ref_bf16, atol=2e-2, rtol=2e-2), \
        "bf16 kernel mismatch vs bf16-quantized reference"

    print("KERNEL_OK")
</pallas_src>

<mosaic_0001>
module attributes {stable_mosaic.version = 11 : i64} {
  func.func @_mlp_residual_kernel(%arg0: i32, %arg1: memref<8x768xf32, #tpu.memory_space<vmem>>, %arg2: memref<768x128xf32, #tpu.memory_space<vmem>>, %arg3: memref<1x128xf32, #tpu.memory_space<vmem>>, %arg4: memref<768x128xf32, #tpu.memory_space<vmem>>, %arg5: memref<1x128xf32, #tpu.memory_space<vmem>>, %arg6: memref<128x128xf32, #tpu.memory_space<vmem>>, %arg7: memref<1x128xf32, #tpu.memory_space<vmem>>, %arg8: memref<128x128xf32, #tpu.memory_space<vmem>>, %arg9: memref<1x128xf32, #tpu.memory_space<vmem>>, %arg10: memref<128x128xf32, #tpu.memory_space<vmem>>, %arg11: memref<1x128xf32, #tpu.memory_space<vmem>>, %arg12: memref<8x128xf32, #tpu.memory_space<vmem>>) attributes {dimension_semantics = [#tpu.dimension_semantics<parallel>], iteration_bounds = array<i64: 1>, scalar_prefetch = 0 : i64, scratch_operands = 0 : i64, tpu.core_type = #tpu.core_type<tc>, window_params = [{transform_indices = @transform_0, window_bounds = array<i64: 8, 768>}, {pipeline_mode = #tpu.pipeline_mode<synchronous>, transform_indices = @transform_1, window_bounds = array<i64: 768, 128>}, {pipeline_mode = #tpu.pipeline_mode<synchronous>, transform_indices = @transform_2, window_bounds = array<i64: 1, 128>}, {pipeline_mode = #tpu.pipeline_mode<synchronous>, transform_indices = @transform_3, window_bounds = array<i64: 768, 128>}, {pipeline_mode = #tpu.pipeline_mode<synchronous>, transform_indices = @transform_4, window_bounds = array<i64: 1, 128>}, {pipeline_mode = #tpu.pipeline_mode<synchronous>, transform_indices = @transform_5, window_bounds = array<i64: 128, 128>}, {pipeline_mode = #tpu.pipeline_mode<synchronous>, transform_indices = @transform_6, window_bounds = array<i64: 1, 128>}, {pipeline_mode = #tpu.pipeline_mode<synchronous>, transform_indices = @transform_7, window_bounds = array<i64: 128, 128>}, {pipeline_mode = #tpu.pipeline_mode<synchronous>, transform_indices = @transform_8, window_bounds = array<i64: 1, 128>}, {pipeline_mode = #tpu.pipeline_mode<synchronous>, transform_indices = @transform_9, window_bounds = array<i64: 128, 128>}, {pipeline_mode = #tpu.pipeline_mode<synchronous>, transform_indices = @transform_10, window_bounds = array<i64: 1, 128>}, {transform_indices = @transform_11, window_bounds = array<i64: 8, 128>}]} {
    %c0 = arith.constant 0 : index
    %c0_0 = arith.constant 0 : index
    %0 = vector.load %arg1[%c0, %c0_0] : memref<8x768xf32, #tpu.memory_space<vmem>>, vector<8x768xf32>
    %c0_1 = arith.constant 0 : index
    %c0_2 = arith.constant 0 : index
    %1 = vector.load %arg2[%c0_1, %c0_2] : memref<768x128xf32, #tpu.memory_space<vmem>>, vector<768x128xf32>
    %cst = arith.constant dense<0.000000e+00> : vector<8x128xf32>
    %2 = tpu.matmul %0, %1, %cst {dimension_numbers = #tpu.dot_dimension_numbers<[1], [0], [0], [1], [0, 0, 1, 1], [], []>} : vector<8x768xf32>, vector<768x128xf32>, vector<8x128xf32> -> vector<8x128xf32>
    %c0_3 = arith.constant 0 : index
    %c0_4 = arith.constant 0 : index
    %3 = vector.load %arg3[%c0_3, %c0_4] : memref<1x128xf32, #tpu.memory_space<vmem>>, vector<1x128xf32>
    %4 = vector.broadcast %3 : vector<1x128xf32> to vector<8x128xf32>
    %5 = arith.addf %2, %4 : vector<8x128xf32>
    %c0_5 = arith.constant 0 : index
    %c0_6 = arith.constant 0 : index
    %6 = vector.load %arg4[%c0_5, %c0_6] : memref<768x128xf32, #tpu.memory_space<vmem>>, vector<768x128xf32>
    %c0_7 = arith.constant 0 : index
    %c0_8 = arith.constant 0 : index
    %7 = vector.load %arg5[%c0_7, %c0_8] : memref<1x128xf32, #tpu.memory_space<vmem>>, vector<1x128xf32>
    %cst_9 = arith.constant dense<0.000000e+00> : vector<8x128xf32>
    %8 = tpu.matmul %0, %6, %cst_9 {dimension_numbers = #tpu.dot_dimension_numbers<[1], [0], [0], [1], [0, 0, 1, 1], [], []>} : vector<8x768xf32>, vector<768x128xf32>, vector<8x128xf32> -> vector<8x128xf32>
    %9 = vector.broadcast %7 : vector<1x128xf32> to vector<8x128xf32>
    %10 = arith.addf %8, %9 : vector<8x128xf32>
    %cst_10 = arith.constant 0.000000e+00 : f32
    %11 = vector.broadcast %cst_10 : f32 to vector<8x128xf32>
    %12 = arith.maximumf %10, %11 : vector<8x128xf32>
    %13 = arith.addf %12, %5 : vector<8x128xf32>
    %c0_11 = arith.constant 0 : index
    %c0_12 = arith.constant 0 : index
    %14 = vector.load %arg6[%c0_11, %c0_12] : memref<128x128xf32, #tpu.memory_space<vmem>>, vector<128x128xf32>
    %c0_13 = arith.constant 0 : index
    %c0_14 = arith.constant 0 : index
    %15 = vector.load %arg7[%c0_13, %c0_14] : memref<1x128xf32, #tpu.memory_space<vmem>>, vector<1x128xf32>
    %cst_15 = arith.constant dense<0.000000e+00> : vector<8x128xf32>
    %16 = tpu.matmul %13, %14, %cst_15 {dimension_numbers = #tpu.dot_dimension_numbers<[1], [0], [0], [1], [0, 0, 1, 1], [], []>} : vector<8x128xf32>, vector<128x128xf32>, vector<8x128xf32> -> vector<8x128xf32>
    %17 = vector.broadcast %15 : vector<1x128xf32> to vector<8x128xf32>
    %18 = arith.addf %16, %17 : vector<8x128xf32>
    %cst_16 = arith.constant 0.000000e+00 : f32
    %19 = vector.broadcast %cst_16 : f32 to vector<8x128xf32>
    %20 = arith.maximumf %18, %19 : vector<8x128xf32>
    %21 = arith.addf %20, %13 : vector<8x128xf32>
    %c0_17 = arith.constant 0 : index
    %c0_18 = arith.constant 0 : index
    %22 = vector.load %arg8[%c0_17, %c0_18] : memref<128x128xf32, #tpu.memory_space<vmem>>, vector<128x128xf32>
    %c0_19 = arith.constant 0 : index
    %c0_20 = arith.constant 0 : index
    %23 = vector.load %arg9[%c0_19, %c0_20] : memref<1x128xf32, #tpu.memory_space<vmem>>, vector<1x128xf32>
    %cst_21 = arith.constant dense<0.000000e+00> : vector<8x128xf32>
    %24 = tpu.matmul %21, %22, %cst_21 {dimension_numbers = #tpu.dot_dimension_numbers<[1], [0], [0], [1], [0, 0, 1, 1], [], []>} : vector<8x128xf32>, vector<128x128xf32>, vector<8x128xf32> -> vector<8x128xf32>
    %25 = vector.broadcast %23 : vector<1x128xf32> to vector<8x128xf32>
    %26 = arith.addf %24, %25 : vector<8x128xf32>
    %cst_22 = arith.constant 0.000000e+00 : f32
    %27 = vector.broadcast %cst_22 : f32 to vector<8x128xf32>
    %28 = arith.maximumf %26, %27 : vector<8x128xf32>
    %29 = arith.addf %28, %21 : vector<8x128xf32>
    %c0_23 = arith.constant 0 : index
    %c0_24 = arith.constant 0 : index
    %30 = vector.load %arg10[%c0_23, %c0_24] : memref<128x128xf32, #tpu.memory_space<vmem>>, vector<128x128xf32>
    %cst_25 = arith.constant dense<0.000000e+00> : vector<8x128xf32>
    %31 = tpu.matmul %29, %30, %cst_25 {dimension_numbers = #tpu.dot_dimension_numbers<[1], [0], [0], [1], [0, 0, 1, 1], [], []>} : vector<8x128xf32>, vector<128x128xf32>, vector<8x128xf32> -> vector<8x128xf32>
    %c0_26 = arith.constant 0 : index
    %c0_27 = arith.constant 0 : index
    %32 = vector.load %arg11[%c0_26, %c0_27] : memref<1x128xf32, #tpu.memory_space<vmem>>, vector<1x128xf32>
    %33 = vector.broadcast %32 : vector<1x128xf32> to vector<8x128xf32>
    %34 = arith.addf %31, %33 : vector<8x128xf32>
    %c0_28 = arith.constant 0 : index
    %c0_29 = arith.constant 0 : index
    %35 = vector.load %arg12[%c0_28, %c0_29] : memref<8x128xf32, #tpu.memory_space<vmem>>, vector<8x128xf32>
    tpu.vector_store %arg12[%c0_28, %c0_29], %34 {strides = array<i32>} : memref<8x128xf32, #tpu.memory_space<vmem>>, vector<8x128xf32>,
    return
  }
  func.func @transform_0(%arg0: i32) -> (i32, i32) {
    %c0_i32 = arith.constant 0 : i32
    %c0_i32_0 = arith.constant 0 : i32
    return %arg0, %c0_i32 : i32, i32
  }
  func.func @transform_1(%arg0: i32) -> (i32, i32) {
    %c0_i32 = arith.constant 0 : i32
    %c0_i32_0 = arith.constant 0 : i32
    %c0_i32_1 = arith.constant 0 : i32
    return %c0_i32, %c0_i32_0 : i32, i32
  }
  func.func @transform_2(%arg0: i32) -> (i32, i32) {
    %c0_i32 = arith.constant 0 : i32
    %c0_i32_0 = arith.constant 0 : i32
    %c0_i32_1 = arith.constant 0 : i32
    return %c0_i32, %c0_i32_0 : i32, i32
  }
  func.func @transform_3(%arg0: i32) -> (i32, i32) {
    %c0_i32 = arith.constant 0 : i32
    %c0_i32_0 = arith.constant 0 : i32
    %c0_i32_1 = arith.constant 0 : i32
    return %c0_i32, %c0_i32_0 : i32, i32
  }
  func.func @transform_4(%arg0: i32) -> (i32, i32) {
    %c0_i32 = arith.constant 0 : i32
    %c0_i32_0 = arith.constant 0 : i32
    %c0_i32_1 = arith.constant 0 : i32
    return %c0_i32, %c0_i32_0 : i32, i32
  }
  func.func @transform_5(%arg0: i32) -> (i32, i32) {
    %c0_i32 = arith.constant 0 : i32
    %c0_i32_0 = arith.constant 0 : i32
    %c0_i32_1 = arith.constant 0 : i32
    return %c0_i32, %c0_i32_0 : i32, i32
  }
  func.func @transform_6(%arg0: i32) -> (i32, i32) {
    %c0_i32 = arith.constant 0 : i32
    %c0_i32_0 = arith.constant 0 : i32
    %c0_i32_1 = arith.constant 0 : i32
    return %c0_i32, %c0_i32_0 : i32, i32
  }
  func.func @transform_7(%arg0: i32) -> (i32, i32) {
    %c0_i32 = arith.constant 0 : i32
    %c0_i32_0 = arith.constant 0 : i32
    %c0_i32_1 = arith.constant 0 : i32
    return %c0_i32, %c0_i32_0 : i32, i32
  }
  func.func @transform_8(%arg0: i32) -> (i32, i32) {
    %c0_i32 = arith.constant 0 : i32
    %c0_i32_0 = arith.constant 0 : i32
    %c0_i32_1 = arith.constant 0 : i32
    return %c0_i32, %c0_i32_0 : i32, i32
  }
  func.func @transform_9(%arg0: i32) -> (i32, i32) {
    %c0_i32 = arith.constant 0 : i32
    %c0_i32_0 = arith.constant 0 : i32
    %c0_i32_1 = arith.constant 0 : i32
    return %c0_i32, %c0_i32_0 : i32, i32
  }
  func.func @transform_10(%arg0: i32) -> (i32, i32) {
    %c0_i32 = arith.constant 0 : i32
    %c0_i32_0 = arith.constant 0 : i32
    %c0_i32_1 = arith.constant 0 : i32
    return %c0_i32, %c0_i32_0 : i32, i32
  }
  func.func @transform_11(%arg0: i32) -> (i32, i32) {
    %c0_i32 = arith.constant 0 : i32
    %c0_i32_0 = arith.constant 0 : i32
    return %arg0, %c0_i32 : i32, i32
  }
}

</mosaic_0001>

<bundles_post_ra>
// kernel: mlp_classifier_deep_residual.1
= control target key start
LH: loop header
LB: loop body
LE: loop exit
PB: predicated region body
PF: predicated region fallthrough
CT: control target
= control target key end

     0   :  { %vm1599_vm0 = vmmov 0   ;;  %s2471_s1 = inlined_call_operand.vmem [shape: f32[768,128], index: 1, kind: input, shape index: {}]   ;;  %s2472_s0 = inlined_call_operand.vmem [shape: f32[8,768], index: 0, kind: input, shape index: {}]   ;;  %s2473_s3 = inlined_call_operand.vmem [shape: f32[768,128], index: 3, kind: input, shape index: {}]   ;;  %s2474_s5 = inlined_call_operand.vmem [shape: f32[128,128], index: 5, kind: input, shape index: {}]   ;;  %s2475_s7 = inlined_call_operand.vmem [shape: f32[128,128], index: 7, kind: input, shape index: {}]   ;;  %s2476_s2 = inlined_call_operand.vmem [shape: f32[1,128], index: 2, kind: input, shape index: {}]   ;;  %s2477_s4 = inlined_call_operand.vmem [shape: f32[1,128], index: 4, kind: input, shape index: {}]   ;;  %s2478_s9 = inlined_call_operand.vmem [shape: f32[128,128], index: 9, kind: input, shape index: {}]   ;;  %s2479_s6 = inlined_call_operand.vmem [shape: f32[1,128], index: 6, kind: input, shape index: {}]   ;;  %s2480_s8 = inlined_call_operand.vmem [shape: f32[1,128], index: 8, kind: input, shape index: {}]   ;;  %s2481_s10 = inlined_call_operand.vmem [shape: f32[1,128], index: 10, kind: input, shape index: {}]   ;;  %s2482_s11 = inlined_call_operand.vmem [shape: f32[8,128], index: 11, kind: output, shape index: {}]  }
   0x1   :  { %v60_v0 = vld [vmem:[%s2471_s1 + $0x80] sm:$0xff]  ;;  %v61_v1 = vld [vmem:[%s2471_s1 + $0x88] sm:$0xff]  ;;  %v62_v11 = vld [vmem:[%s2471_s1 + $0x90] sm:$0xff] }
   0x2   :  { %v44_v2 = vld [vmem:[%s2471_s1] sm:$0xff]  ;;  %v1331_v3 = vpack.c.bf16 %v61_v1, %v60_v0  ;;  %v45_v4 = vld [vmem:[%s2471_s1 + $0x8] sm:$0xff]  ;;  %v63_v13 = vld [vmem:[%s2471_s1 + $0x98] sm:$0xff] }
   0x3   :  { %v92_v5 = vld [vmem:[%s2471_s1 + $0x180] sm:$0xff]  ;;  %v93_v6 = vld [vmem:[%s2471_s1 + $0x188] sm:$0xff]  ;;  %v1333_v7 = vpack.c.bf16 %v45_v4, %v44_v2  ;;  %v46_v14 = vld [vmem:[%s2471_s1 + $0x10] sm:$0xff]  ;;  %v1335_v16 = vpack.c.bf16 %v63_v13, %v62_v11 }
   0x4   :  { %v1363_v8 = vpack.c.bf16 %v93_v6, %v92_v5  ;;  %v76_v9 = vld [vmem:[%s2471_s1 + $0x100] sm:$0xff]  ;;  %v77_v10 = vld [vmem:[%s2471_s1 + $0x108] sm:$0xff]  ;;  %1332 = vmatprep.subr.bf16.mxu0 %v1331_v3  ;;  %v47_v15 = vld [vmem:[%s2471_s1 + $0x18] sm:$0xff] }
   0x5   :  { %v1365_v12 = vpack.c.bf16 %v77_v10, %v76_v9  ;;  %1334 = vmatpush3.bf16.msra.mxu0 %v1333_v7  ;;  %v1337_v17 = vpack.c.bf16 %v47_v15, %v46_v14  ;;  %v94_v18 = vld [vmem:[%s2471_s1 + $0x190] sm:$0xff]  ;;  %v95_v19 = vld [vmem:[%s2471_s1 + $0x198] sm:$0xff]  ;;  %v64_v23 = vld [vmem:[%s2471_s1 + $0xa0] sm:$0xff] }
   0x6   :  { %1364 = vmatprep.subr.bf16.mxu1 %v1363_v8  ;;  %v78_v20 = vld [vmem:[%s2471_s1 + $0x110] sm:$0xff]  ;;  %v1367_v21 = vpack.c.bf16 %v95_v19, %v94_v18  ;;  %v79_v22 = vld [vmem:[%s2471_s1 + $0x118] sm:$0xff]  ;;  %v65_v24 = vld [vmem:[%s2471_s1 + $0xa8] sm:$0xff]  ;;  %1336 = vmatprep.subr.bf16.mxu0 %v1335_v16 }
   0x7   :  { %1366 = vmatpush3.bf16.msra.mxu1 %v1365_v12  ;;  %v1369_v25 = vpack.c.bf16 %v79_v22, %v78_v20  ;;  %v1339_v26 = vpack.c.bf16 %v65_v24, %v64_v23  ;;  %v48_v27 = vld [vmem:[%s2471_s1 + $0x20] sm:$0xff]  ;;  %v49_v28 = vld [vmem:[%s2471_s1 + $0x28] sm:$0xff]  ;;  %v66_v35 = vld [vmem:[%s2471_s1 + $0xb0] sm:$0xff] }
   0x8   :  { %v96_v29 = vld [vmem:[%s2471_s1 + $0x1a0] sm:$0xff]  ;;  %1368 = vmatprep.subr.bf16.mxu1 %v1367_v21  ;;  %v97_v30 = vld [vmem:[%s2471_s1 + $0x1a8] sm:$0xff]  ;;  %v1341_v33 = vpack.c.bf16 %v49_v28, %v48_v27  ;;  %v67_v36 = vld [vmem:[%s2471_s1 + $0xb8] sm:$0xff] }
   0x9   :  { %v80_v31 = vld [vmem:[%s2471_s1 + $0x120] sm:$0xff]  ;;  %v81_v32 = vld [vmem:[%s2471_s1 + $0x128] sm:$0xff]  ;;  %1338 = vmatpush3.bf16.msra.mxu0 %v1337_v17  ;;  %v1371_v34 = vpack.c.bf16 %v97_v30, %v96_v29  ;;  %v50_v37 = vld [vmem:[%s2471_s1 + $0x30] sm:$0xff]  ;;  %v1343_v39 = vpack.c.bf16 %v67_v36, %v66_v35 }
   0xa   :  { %1340 = vmatprep.subr.bf16.mxu0 %v1339_v26  ;;  %v1373_v38 = vpack.c.bf16 %v81_v32, %v80_v31  ;;  %v51_v40 = vld [vmem:[%s2471_s1 + $0x38] sm:$0xff]  ;;  %v98_v41 = vld [vmem:[%s2471_s1 + $0x1b0] sm:$0xff]  ;;  %v68_v46 = vld [vmem:[%s2471_s1 + $0xc0] sm:$0xff] }
   0xb   :  { %1370 = vmatpush3.bf16.msra.mxu1 %v1369_v25  ;;  %v99_v42 = vld [vmem:[%s2471_s1 + $0x1b8] sm:$0xff]  ;;  %v82_v44 = vld [vmem:[%s2471_s1 + $0x130] sm:$0xff]  ;;  %v69_v47 = vld [vmem:[%s2471_s1 + $0xc8] sm:$0xff]  ;;  %v1345_v48 = vpack.c.bf16 %v51_v40, %v50_v37 }
   0xc   :  { %1372 = vmatprep.subr.bf16.mxu1 %v1371_v34  ;;  %v1375_v43 = vpack.c.bf16 %v99_v42, %v98_v41  ;;  %v83_v45 = vld [vmem:[%s2471_s1 + $0x138] sm:$0xff]  ;;  %v100_v49 = vld [vmem:[%s2471_s1 + $0x1c0] sm:$0xff]  ;;  %v101_v50 = vld [vmem:[%s2471_s1 + $0x1c8] sm:$0xff]  ;;  %v1347_v52 = vpack.c.bf16 %v69_v47, %v68_v46 }
   0xd   :  { %1342 = vmatpush3.bf16.msra.mxu0 %v1341_v33  ;;  %v1377_v51 = vpack.c.bf16 %v83_v45, %v82_v44  ;;  %v52_v53 = vld [vmem:[%s2471_s1 + $0x40] sm:$0xff]  ;;  %v53_v54 = vld [vmem:[%s2471_s1 + $0x48] sm:$0xff]  ;;  %v1379_v56 = vpack.c.bf16 %v101_v50, %v100_v49  ;;  %v70_v58 = vld [vmem:[%s2471_s1 + $0xd0] sm:$0xff] }
   0xe   :  { %1344 = vmatprep.subr.bf16.mxu0 %v1343_v39  ;;  %v84_v55 = vld [vmem:[%s2471_s1 + $0x140] sm:$0xff]  ;;  %v85_v57 = vld [vmem:[%s2471_s1 + $0x148] sm:$0xff]  ;;  %v71_v59 = vld [vmem:[%s2471_s1 + $0xd8] sm:$0xff]  ;;  %v1349_v62 = vpack.c.bf16 %v53_v54, %v52_v53 }
   0xf   :  { %1374 = vmatpush3.bf16.msra.mxu1 %v1373_v38  ;;  %v102_v60 = vld [vmem:[%s2471_s1 + $0x1d0] sm:$0xff]  ;;  %v103_v61 = vld [vmem:[%s2471_s1 + $0x1d8] sm:$0xff]  ;;  %v1381_v63 = vpack.c.bf16 %v85_v57, %v84_v55  ;;  %v1351_v0 = vpack.c.bf16 %v71_v59, %v70_v58  ;;  %v72_v6 = vld [vmem:[%s2471_s1 + $0xe0] sm:$0xff] }
  0x10   :  { %1376 = vmatprep.subr.bf16.mxu1 %v1375_v43  ;;  %v54_v1 = vld [vmem:[%s2471_s1 + $0x50] sm:$0xff]  ;;  %v55_v2 = vld [vmem:[%s2471_s1 + $0x58] sm:$0xff]  ;;  %v1383_v4 = vpack.c.bf16 %v103_v61, %v102_v60  ;;  %v73_v7 = vld [vmem:[%s2471_s1 + $0xe8] sm:$0xff] }
  0x11   :  { %1346 = vmatpush3.bf16.msra.mxu0 %v1345_v48  ;;  %v86_v3 = vld [vmem:[%s2471_s1 + $0x150] sm:$0xff]  ;;  %v87_v5 = vld [vmem:[%s2471_s1 + $0x158] sm:$0xff]  ;;  %v104_v8 = vld [vmem:[%s2471_s1 + $0x1e0] sm:$0xff]  ;;  %v1353_v10 = vpack.c.bf16 %v55_v2, %v54_v1  ;;  %v1355_v14 = vpack.c.bf16 %v73_v7, %v72_v6 }
  0x12   :  { %1348 = vmatprep.subr.bf16.mxu0 %v1347_v52  ;;  %v105_v9 = vld [vmem:[%s2471_s1 + $0x1e8] sm:$0xff]  ;;  %v56_v11 = vld [vmem:[%s2471_s1 + $0x60] sm:$0xff]  ;;  %v1385_v13 = vpack.c.bf16 %v87_v5, %v86_v3  ;;  %v74_v19 = vld [vmem:[%s2471_s1 + $0xf0] sm:$0xff] }
  0x13   :  { %1378 = vmatpush3.bf16.msra.mxu1 %v1377_v51  ;;  %v57_v12 = vld [vmem:[%s2471_s1 + $0x68] sm:$0xff]  ;;  %v88_v15 = vld [vmem:[%s2471_s1 + $0x160] sm:$0xff]  ;;  %v1387_v18 = vpack.c.bf16 %v105_v9, %v104_v8  ;;  %v75_v20 = vld [vmem:[%s2471_s1 + $0xf8] sm:$0xff] }
  0x14   :  { %1380 = vmatprep.subr.bf16.mxu1 %v1379_v56  ;;  %v89_v16 = vld [vmem:[%s2471_s1 + $0x168] sm:$0xff]  ;;  %v1844_v21 = vld [vmem:[%s2472_s0 + $0x18] sm:$0xff]  ;;  %v106_v22 = vld [vmem:[%s2471_s1 + $0x1f0] sm:$0xff]  ;;  %v1357_v24 = vpack.c.bf16 %v57_v12, %v56_v11  ;;  %v1359_v26 = vpack.c.bf16 %v75_v20, %v74_v19 }
  0x15   :  { %1350 = vmatpush3.bf16.msra.mxu0 %v1349_v62  ;;  %v1832_v17 = vld [vmem:[%s2472_s0 + $0x8] sm:$0xff]  ;;  %v107_v23 = vld [vmem:[%s2471_s1 + $0x1f8] sm:$0xff]  ;;  %281 = vmatprep.mubr.f32.mxu1 %v1844_v21  ;;  %v1389_v25 = vpack.c.bf16 %v89_v16, %v88_v15  ;;  %v58_v27 = vld [vmem:[%s2471_s1 + $0x70] sm:$0xff] }
  0x16   :  { %1352 = vmatprep.subr.bf16.mxu0 %v1351_v0  ;;  %211 = vmatprep.mubr.f32.mxu0 %v1832_v17  ;;  %v59_v28 = vld [vmem:[%s2471_s1 + $0x78] sm:$0xff]  ;;  %v90_v29 = vld [vmem:[%s2471_s1 + $0x170] sm:$0xff]  ;;  %v1391_v30 = vpack.c.bf16 %v107_v23, %v106_v22  ;;  %v124_v32 = vld [vmem:[%s2471_s1 + $0x280] sm:$0xff] }
  0x17   :  { %1382 = vmatpush3.bf16.msra.mxu1 %v1381_v63  ;;  %v91_v31 = vld [vmem:[%s2471_s1 + $0x178] sm:$0xff]  ;;  %v125_v33 = vld [vmem:[%s2471_s1 + $0x288] sm:$0xff]  ;;  %v373_v34 = vld [vmem:[%s2473_s3 + $0x80] sm:$0xff]  ;;  %v1361_v36 = vpack.c.bf16 %v59_v28, %v58_v27 }
  0x18   :  { %1384 = vmatprep.subr.bf16.mxu1 %v1383_v4  ;;  %v374_v35 = vld [vmem:[%s2473_s3 + $0x88] sm:$0xff]  ;;  %v1393_v37 = vpack.c.bf16 %v91_v31, %v90_v29  ;;  %v1395_v38 = vpack.c.bf16 %v125_v33, %v124_v32  ;;  %v108_v39 = vld [vmem:[%s2471_s1 + $0x200] sm:$0xff]  ;;  %v126_v44 = vld [vmem:[%s2471_s1 + $0x290] sm:$0xff] }
  0x19   :  { %1354 = vmatpush3.bf16.msra.mxu0 %v1353_v10  ;;  %v109_v40 = vld [vmem:[%s2471_s1 + $0x208] sm:$0xff]  ;;  %v357_v41 = vld [vmem:[%s2473_s3] sm:$0xff]  ;;  %v1427_v42 = vpack.c.bf16 %v374_v35, %v373_v34  ;;  %v127_v45 = vld [vmem:[%s2471_s1 + $0x298] sm:$0xff] }
  0x1a   :  { %1356 = vmatprep.subr.bf16.mxu0 %v1355_v14  ;;  %v358_v43 = vld [vmem:[%s2473_s3 + $0x8] sm:$0xff]  ;;  %v375_v46 = vld [vmem:[%s2473_s3 + $0x90] sm:$0xff]  ;;  %v376_v47 = vld [vmem:[%s2473_s3 + $0x98] sm:$0xff]  ;;  %v1397_v49 = vpack.c.bf16 %v109_v40, %v108_v39  ;;  %v1399_v52 = vpack.c.bf16 %v127_v45, %v126_v44 }
  0x1b   :  { %1386 = vmatpush3.bf16.msra.mxu1 %v1385_v13  ;;  %v1904_v48 = vld [vmem:[%s2472_s0] sm:$0xff]  ;;  %v1909_v50 = vld [vmem:[%s2472_s0 + $0x10] sm:$0xff]  ;;  %v1429_v51 = vpack.c.bf16 %v358_v43, %v357_v41  ;;  %v111_v54 = vld [vmem:[%s2471_s1 + $0x218] sm:$0xff]  ;;  %v1431_v56 = vpack.c.bf16 %v376_v47, %v375_v46 }
  0x1c   :  { %1388 = vmatprep.subr.bf16.mxu1 %v1387_v18  ;;  %v110_v53 = vld [vmem:[%s2471_s1 + $0x210] sm:$0xff]  ;;  %v360_v57 = vld [vmem:[%s2473_s3 + $0x18] sm:$0xff]  ;;  %v128_v58 = vld [vmem:[%s2471_s1 + $0x2a0] sm:$0xff] }
  0x1d   :  { %1358 = vmatpush3.bf16.msra.mxu0 %v1357_v24  ;;  %v359_v55 = vld [vmem:[%s2473_s3 + $0x10] sm:$0xff]  ;;  %v129_v59 = vld [vmem:[%s2471_s1 + $0x2a8] sm:$0xff]  ;;  %v377_v60 = vld [vmem:[%s2473_s3 + $0xa0] sm:$0xff]  ;;  %v1401_v62 = vpack.c.bf16 %v111_v54, %v110_v53 }
  0x1e   :  { %1360 = vmatprep.subr.bf16.mxu0 %v1359_v26  ;;  %v378_v61 = vld [vmem:[%s2473_s3 + $0xa8] sm:$0xff]  ;;  %v1433_v63 = vpack.c.bf16 %v360_v57, %v359_v55  ;;  %v1403_v0 = vpack.c.bf16 %v129_v59, %v128_v58  ;;  %v112_v1 = vld [vmem:[%s2471_s1 + $0x220] sm:$0xff]  ;;  %v130_v6 = vld [vmem:[%s2471_s1 + $0x2b0] sm:$0xff] }
  0x1f   :  { %1390 = vmatpush3.bf16.msra.mxu1 %v1389_v25  ;;  %v113_v2 = vld [vmem:[%s2471_s1 + $0x228] sm:$0xff]  ;;  %v361_v3 = vld [vmem:[%s2473_s3 + $0x20] sm:$0xff]  ;;  %v1435_v4 = vpack.c.bf16 %v378_v61, %v377_v60  ;;  %v131_v7 = vld [vmem:[%s2471_s1 + $0x2b8] sm:$0xff] }
  0x20   :  { %1392 = vmatprep.subr.bf16.mxu1 %v1391_v30  ;;  %v362_v5 = vld [vmem:[%s2473_s3 + $0x28] sm:$0xff]  ;;  %v379_v8 = vld [vmem:[%s2473_s3 + $0xb0] sm:$0xff]  ;;  %v380_v9 = vld [vmem:[%s2473_s3 + $0xb8] sm:$0xff]  ;;  %v1405_v10 = vpack.c.bf16 %v113_v2, %v112_v1  ;;  %v1407_v12 = vpack.c.bf16 %v131_v7, %v130_v6 }
  0x21   :  { %1362 = vmatpush3.bf16.msra.mxu0 %v1361_v36  ;;  %v1437_v11 = vpack.c.bf16 %v362_v5, %v361_v3  ;;  %v114_v13 = vld [vmem:[%s2471_s1 + $0x230] sm:$0xff]  ;;  %v115_v14 = vld [vmem:[%s2471_s1 + $0x238] sm:$0xff]  ;;  %v1439_v16 = vpack.c.bf16 %v380_v9, %v379_v8  ;;  %v132_v18 = vld [vmem:[%s2471_s1 + $0x2c0] sm:$0xff] }
  0x22   :  { %1396 = vmatprep.subr.bf16.mxu0 %v1395_v38  ;;  %v363_v15 = vld [vmem:[%s2473_s3 + $0x30] sm:$0xff]  ;;  %v133_v19 = vld [vmem:[%s2471_s1 + $0x2c8] sm:$0xff]  ;;  %v381_v20 = vld [vmem:[%s2473_s3 + $0xc0] sm:$0xff]  ;;  %v1409_v23 = vpack.c.bf16 %v115_v14, %v114_v13 }
  0x23   :  { %1394 = vmatpush3.bf16.msra.mxu1 %v1393_v37  ;;  %v382_v22 = vld [vmem:[%s2473_s3 + $0xc8] sm:$0xff]  ;;  %v1411_v26 = vpack.c.bf16 %v133_v19, %v132_v18  ;;  %v116_v27 = vld [vmem:[%s2471_s1 + $0x240] sm:$0xff]  ;;  %v134_v32 = vld [vmem:[%s2471_s1 + $0x2d0] sm:$0xff] }
  0x24   :  { %1428 = vmatprep.subr.bf16.mxu1 %v1427_v42  ;;  %212 = vmatmul.mubr.f32.vlgmr.msra.gmra.mrb[0].mxu0 %v1904_v48  ;;  %v1989_v24 = vld [vmem:[%s2472_s0 + $0x28] sm:$0xff]  ;;  %v365_v29 = vld [vmem:[%s2473_s3 + $0x40] sm:$0xff]  ;;  %v1443_v30 = vpack.c.bf16 %v382_v22, %v381_v20  ;;  %v135_v33 = vld [vmem:[%s2471_s1 + $0x2d8] sm:$0xff] }
  0x25   :  { %1398 = vmatpush3.bf16.msra.mxu0 %v1397_v49  ;;  %v117_v28 = vld [vmem:[%s2471_s1 + $0x248] sm:$0xff]  ;;  %351 = vmatprep.mubr.f32.mxu0 %v1989_v24  ;;  %v383_v34 = vld [vmem:[%s2473_s3 + $0xd0] sm:$0xff]  ;;  %v384_v35 = vld [vmem:[%s2473_s3 + $0xd8] sm:$0xff]  ;;  %v1415_v38 = vpack.c.bf16 %v135_v33, %v134_v32 }
  0x26   :  { %282 = vmatmul.mubr.f32.vlgmr.msra.gmra.mrb[0].mxu1 %v1909_v50  ;;  %1400 = vmatprep.subr.bf16.mxu0 %v1399_v52  ;;  %v366_v31 = vld [vmem:[%s2473_s3 + $0x48] sm:$0xff]  ;;  %v1413_v36 = vpack.c.bf16 %v117_v28, %v116_v27  ;;  %v118_v39 = vld [vmem:[%s2471_s1 + $0x250] sm:$0xff]  ;;  %v119_v40 = vld [vmem:[%s2471_s1 + $0x258] sm:$0xff]  ;;  %v1447_v42 = vpack.c.bf16 %v384_v35, %v383_v34 }
  0x27   :  { %1430 = vmatpush3.bf16.msra.mxu1 %v1429_v51  ;;  %524 = vmatprep.mubr.f32.mxu1 %v1832_v17  ;;  %v364_v17 = vld [vmem:[%s2473_s3 + $0x38] sm:$0xff]  ;;  %v1445_v37 = vpack.c.bf16 %v366_v31, %v365_v29  ;;  %v367_v41 = vld [vmem:[%s2473_s3 + $0x50] sm:$0xff]  ;;  %v136_v44 = vld [vmem:[%s2471_s1 + $0x2e0] sm:$0xff]  ;;  %v1417_v49 = vpack.c.bf16 %v119_v40, %v118_v39 }
  0x28   :  { %1432 = vmatprep.subr.bf16.mxu1 %v1431_v56  ;;  %v1441_v25 = vpack.c.bf16 %v364_v17, %v363_v15  ;;  %v368_v43 = vld [vmem:[%s2473_s3 + $0x58] sm:$0xff]  ;;  %v137_v45 = vld [vmem:[%s2471_s1 + $0x2e8] sm:$0xff]  ;;  %v385_v46 = vld [vmem:[%s2473_s3 + $0xe0] sm:$0xff] }
  0x29   :  { %1402 = vmatpush3.bf16.msra.mxu0 %v1401_v62  ;;  %v386_v47 = vld [vmem:[%s2473_s3 + $0xe8] sm:$0xff]  ;;  %v1449_v51 = vpack.c.bf16 %v368_v43, %v367_v41  ;;  %v1419_v52 = vpack.c.bf16 %v137_v45, %v136_v44  ;;  %v120_v53 = vld [vmem:[%s2471_s1 + $0x260] sm:$0xff]  ;;  %v138_v58 = vld [vmem:[%s2471_s1 + $0x2f0] sm:$0xff] }
  0x2a   :  { %1404 = vmatprep.subr.bf16.mxu0 %v1403_v0  ;;  %v121_v54 = vld [vmem:[%s2471_s1 + $0x268] sm:$0xff]  ;;  %v369_v55 = vld [vmem:[%s2473_s3 + $0x60] sm:$0xff]  ;;  %v1451_v56 = vpack.c.bf16 %v386_v47, %v385_v46  ;;  %v139_v59 = vld [vmem:[%s2471_s1 + $0x2f8] sm:$0xff] }
  0x2b   :  { %1434 = vmatpush3.bf16.msra.mxu1 %v1433_v63  ;;  %v370_v57 = vld [vmem:[%s2473_s3 + $0x68] sm:$0xff]  ;;  %v387_v60 = vld [vmem:[%s2473_s3 + $0xf0] sm:$0xff]  ;;  %v388_v61 = vld [vmem:[%s2473_s3 + $0xf8] sm:$0xff]  ;;  %v1421_v62 = vpack.c.bf16 %v121_v54, %v120_v53  ;;  %v1423_v0 = vpack.c.bf16 %v139_v59, %v138_v58 }
  0x2c   :  { %1436 = vmatprep.subr.bf16.mxu1 %v1435_v4  ;;  %v1453_v63 = vpack.c.bf16 %v370_v57, %v369_v55  ;;  %v122_v1 = vld [vmem:[%s2471_s1 + $0x270] sm:$0xff]  ;;  %v123_v2 = vld [vmem:[%s2471_s1 + $0x278] sm:$0xff]  ;;  %v1455_v4 = vpack.c.bf16 %v388_v61, %v387_v60  ;;  %v405_v6 = vld [vmem:[%s2473_s3 + $0x180] sm:$0xff] }
  0x2d   :  { %1406 = vmatpush3.bf16.msra.mxu0 %v1405_v10  ;;  %v371_v3 = vld [vmem:[%s2473_s3 + $0x70] sm:$0xff]  ;;  %v372_v5 = vld [vmem:[%s2473_s3 + $0x78] sm:$0xff]  ;;  %v406_v7 = vld [vmem:[%s2473_s3 + $0x188] sm:$0xff]  ;;  %v1425_v10 = vpack.c.bf16 %v123_v2, %v122_v1 }
  0x2e   :  { %1408 = vmatprep.subr.bf16.mxu0 %v1407_v12  ;;  %v437_v8 = vld [vmem:[%s2473_s3 + $0x280] sm:$0xff]  ;;  %v438_v9 = vld [vmem:[%s2473_s3 + $0x288] sm:$0xff]  ;;  %v1459_v12 = vpack.c.bf16 %v406_v7, %v405_v6  ;;  %v407_v18 = vld [vmem:[%s2473_s3 + $0x190] sm:$0xff] }
  0x2f   :  { %1438 = vmatpush3.bf16.msra.mxu1 %v1437_v11  ;;  %v1457_v11 = vpack.c.bf16 %v372_v5, %v371_v3  ;;  %v389_v13 = vld [vmem:[%s2473_s3 + $0x100] sm:$0xff]  ;;  %v390_v14 = vld [vmem:[%s2473_s3 + $0x108] sm:$0xff]  ;;  %v408_v19 = vld [vmem:[%s2473_s3 + $0x198] sm:$0xff] }
  0x30   :  { %1440 = vmatprep.subr.bf16.mxu1 %v1439_v16  ;;  %v421_v15 = vld [vmem:[%s2473_s3 + $0x200] sm:$0xff]  ;;  %v1491_v16 = vpack.c.bf16 %v438_v9, %v437_v8  ;;  %v422_v17 = vld [vmem:[%s2473_s3 + $0x208] sm:$0xff]  ;;  %v439_v20 = vld [vmem:[%s2473_s3 + $0x290] sm:$0xff]  ;;  %v1463_v27 = vpack.c.bf16 %v408_v19, %v407_v18 }
  0x31   :  { %1410 = vmatpush3.bf16.msra.mxu0 %v1409_v23  ;;  %v440_v22 = vld [vmem:[%s2473_s3 + $0x298] sm:$0xff]  ;;  %v2115_v23 = vld [vmem:[%s2472_s0 + $0x20] sm:$0xff]  ;;  %v391_v28 = vld [vmem:[%s2473_s3 + $0x110] sm:$0xff] }
  0x32   :  { %1412 = vmatprep.subr.bf16.mxu0 %v1411_v26  ;;  %v1493_v26 = vpack.c.bf16 %v422_v17, %v421_v15  ;;  %v392_v29 = vld [vmem:[%s2473_s3 + $0x118] sm:$0xff]  ;;  %v1495_v31 = vpack.c.bf16 %v440_v22, %v439_v20  ;;  %v409_v33 = vld [vmem:[%s2473_s3 + $0x1a0] sm:$0xff]  ;;  %v410_v34 = vld [vmem:[%s2473_s3 + $0x1a8] sm:$0xff] }
  0x33   :  { %1442 = vmatpush3.bf16.msra.mxu1 %v1441_v25  ;;  %v1461_v25 = vpack.c.bf16 %v390_v14, %v389_v13  ;;  %v424_v32 = vld [vmem:[%s2473_s3 + $0x218] sm:$0xff]  ;;  %v441_v35 = vld [vmem:[%s2473_s3 + $0x2a0] sm:$0xff]  ;;  %v1467_v39 = vpack.c.bf16 %v410_v34, %v409_v33  ;;  %v394_v41 = vld [vmem:[%s2473_s3 + $0x128] sm:$0xff] }
  0x34   :  { %1444 = vmatprep.subr.bf16.mxu1 %v1443_v30  ;;  %v423_v30 = vld [vmem:[%s2473_s3 + $0x210] sm:$0xff]  ;;  %v393_v40 = vld [vmem:[%s2473_s3 + $0x120] sm:$0xff]  ;;  %v412_v45 = vld [vmem:[%s2473_s3 + $0x1b8] sm:$0xff] }
  0x35   :  { %1414 = vmatpush3.bf16.msra.mxu0 %v1413_v36  ;;  %v442_v36 = vld [vmem:[%s2473_s3 + $0x2a8] sm:$0xff]  ;;  %v411_v44 = vld [vmem:[%s2473_s3 + $0x1b0] sm:$0xff]  ;;  %v444_v47 = vld [vmem:[%s2473_s3 + $0x2b8] sm:$0xff] }
  0x36   :  { %1416 = vmatprep.subr.bf16.mxu0 %v1415_v38  ;;  %v1497_v38 = vpack.c.bf16 %v424_v32, %v423_v30  ;;  %v1499_v43 = vpack.c.bf16 %v442_v36, %v441_v35  ;;  %v443_v46 = vld [vmem:[%s2473_s3 + $0x2b0] sm:$0xff]  ;;  %v396_v53 = vld [vmem:[%s2473_s3 + $0x138] sm:$0xff]  ;;  %v414_v57 = vld [vmem:[%s2473_s3 + $0x1c8] sm:$0xff] }
  0x37   :  { %1446 = vmatpush3.bf16.msra.mxu1 %v1445_v37  ;;  %v1465_v37 = vpack.c.bf16 %v392_v29, %v391_v28  ;;  %v427_v54 = vld [vmem:[%s2473_s3 + $0x230] sm:$0xff]  ;;  %v428_v55 = vld [vmem:[%s2473_s3 + $0x238] sm:$0xff]  ;;  %v445_v58 = vld [vmem:[%s2473_s3 + $0x2c0] sm:$0xff] }
  0x38   :  { %1448 = vmatprep.subr.bf16.mxu1 %v1447_v42  ;;  %v425_v42 = vld [vmem:[%s2473_s3 + $0x220] sm:$0xff]  ;;  %v446_v59 = vld [vmem:[%s2473_s3 + $0x2c8] sm:$0xff]  ;;  %v1505_v61 = vpack.c.bf16 %v428_v55, %v427_v54  ;;  %v416_v5 = vld [vmem:[%s2473_s3 + $0x1d8] sm:$0xff] }
  0x39   :  { %1418 = vmatpush3.bf16.msra.mxu0 %v1417_v49  ;;  %v1469_v49 = vpack.c.bf16 %v394_v41, %v393_v40  ;;  %v429_v1 = vld [vmem:[%s2473_s3 + $0x240] sm:$0xff]  ;;  %v1507_v2 = vpack.c.bf16 %v446_v59, %v445_v58  ;;  %v430_v3 = vld [vmem:[%s2473_s3 + $0x248] sm:$0xff]  ;;  %v447_v6 = vld [vmem:[%s2473_s3 + $0x2d0] sm:$0xff] }
  0x3a   :  { %1420 = vmatprep.subr.bf16.mxu0 %v1419_v52  ;;  %v1471_v52 = vpack.c.bf16 %v412_v45, %v411_v44  ;;  %v448_v7 = vld [vmem:[%s2473_s3 + $0x2d8] sm:$0xff]  ;;  %v1509_v9 = vpack.c.bf16 %v430_v3, %v429_v1  ;;  %v431_v13 = vld [vmem:[%s2473_s3 + $0x250] sm:$0xff]  ;;  %v418_v17 = vld [vmem:[%s2473_s3 + $0x1e8] sm:$0xff]  ;;  %v1598_v44 = vmov 0.0|0.0   ;;  %v1600_v3 = vmov 0.0  }
  0x3b   :  { %1450 = vmatpush3.bf16.msra.mxu1 %v1449_v51  ;;  %v1511_v14 = vpack.c.bf16 %v448_v7, %v447_v6  ;;  %v432_v15 = vld [vmem:[%s2473_s3 + $0x258] sm:$0xff]  ;;  %v449_v18 = vld [vmem:[%s2473_s3 + $0x2e0] sm:$0xff]  ;;  %v450_v19 = vld [vmem:[%s2473_s3 + $0x2e8] sm:$0xff] }
  0x3c   :  { %1452 = vmatprep.subr.bf16.mxu1 %v1451_v56  ;;  %v413_v56 = vld [vmem:[%s2473_s3 + $0x1c0] sm:$0xff]  ;;  %v1513_v22 = vpack.c.bf16 %v432_v15, %v431_v13  ;;  %v1515_v29 = vpack.c.bf16 %v450_v19, %v449_v18  ;;  %v434_v30 = vld [vmem:[%s2473_s3 + $0x268] sm:$0xff]  ;;  %v420_v32 = vld [vmem:[%s2473_s3 + $0x1f8] sm:$0xff] }
  0x3d   :  { %1422 = vmatpush3.bf16.msra.mxu0 %v1421_v62  ;;  %v1475_v62 = vpack.c.bf16 %v414_v57, %v413_v56  ;;  %v433_v28 = vld [vmem:[%s2473_s3 + $0x260] sm:$0xff]  ;;  %v451_v33 = vld [vmem:[%s2473_s3 + $0x2f0] sm:$0xff]  ;;  %v452_v34 = vld [vmem:[%s2473_s3 + $0x2f8] sm:$0xff] }
  0x3e   :  { %1424 = vmatprep.subr.bf16.mxu0 %v1423_v0  ;;  %v398_v0 = vld [vmem:[%s2473_s3 + $0x148] sm:$0xff]  ;;  %v1517_v36 = vpack.c.bf16 %v434_v30, %v433_v28  ;;  %v1519_v40 = vpack.c.bf16 %v452_v34, %v451_v33  ;;  %v435_v41 = vld [vmem:[%s2473_s3 + $0x270] sm:$0xff]  ;;  %v672_v45 = vld [vmem:[%s2474_s5] sm:$0xff] }
  0x3f   :  { %1454 = vmatpush3.bf16.msra.mxu1 %v1453_v63  ;;  %v397_v63 = vld [vmem:[%s2473_s3 + $0x140] sm:$0xff]  ;;  %v679_v54 = vld [vmem:[%s2474_s5 + $0x38] sm:$0xff]  ;;  %v681_v56 = vld [vmem:[%s2474_s5 + $0x48] sm:$0xff] }
  0x40   :  { %1456 = vmatprep.subr.bf16.mxu1 %v1455_v4  ;;  %v415_v4 = vld [vmem:[%s2473_s3 + $0x1d0] sm:$0xff]  ;;  %v1477_v8 = vpack.c.bf16 %v398_v0, %v397_v63  ;;  %v680_v55 = vld [vmem:[%s2474_s5 + $0x40] sm:$0xff]  ;;  %v683_v59 = vld [vmem:[%s2474_s5 + $0x58] sm:$0xff] }
  0x41   :  { %1426 = vmatpush3.bf16.msra.mxu0 %v1425_v10  ;;  %v1479_v10 = vpack.c.bf16 %v416_v5, %v415_v4  ;;  %v1536_v57 = vpack.c.bf16 %v681_v56, %v680_v55  ;;  %v682_v58 = vld [vmem:[%s2474_s5 + $0x50] sm:$0xff]  ;;  %v687_v1 = vld [vmem:[%s2474_s5 + $0x78] sm:$0xff]  ;;  %v767_v4 = vld [vmem:[%s2475_s7] sm:$0xff] }
  0x42   :  { %1460 = vmatprep.subr.bf16.mxu0 %v1459_v12  ;;  %v400_v12 = vld [vmem:[%s2473_s3 + $0x158] sm:$0xff]  ;;  %v686_v0 = vld [vmem:[%s2474_s5 + $0x70] sm:$0xff]  ;;  %v768_v5 = vld [vmem:[%s2475_s7 + $0x8] sm:$0xff] }
  0x43   :  { %1458 = vmatpush3.bf16.msra.mxu1 %v1457_v11  ;;  %v399_v11 = vld [vmem:[%s2473_s3 + $0x150] sm:$0xff]  ;;  %v1548_v7 = vpack.c.bf16 %v768_v5, %v767_v4  ;;  %v782_v55 = vld [vmem:[%s2475_s7 + $0x78] sm:$0xff]  ;;  %v870_v5 = vld [vmem:[%s2478_s9 + $0x40] sm:$0xff] }
  0x44   :  { %1492 = vmatprep.subr.bf16.mxu1 %v1491_v16  ;;  %352 = vmatmul.mubr.f32.vlgmr.msra.gmra.mrb[2].mxu0 %v2115_v23  ;;  %v417_v16 = vld [vmem:[%s2473_s3 + $0x1e0] sm:$0xff]  ;;  %v1481_v20 = vpack.c.bf16 %v400_v12, %v399_v11  ;;  %v769_v6 = vld [vmem:[%s2475_s7 + $0x10] sm:$0xff]  ;;  %v772_v11 = vld [vmem:[%s2475_s7 + $0x28] sm:$0xff] }
  0x45   :  { %1462 = vmatpush3.bf16.msra.mxu0 %v1461_v25  ;;  %594 = vmatprep.mubr.f32.mxu0 %v1844_v21  ;;  %v395_v21 = vld [vmem:[%s2473_s3 + $0x130] sm:$0xff]  ;;  %v1483_v25 = vpack.c.bf16 %v418_v17, %v417_v16  ;;  %v775_v16 = vld [vmem:[%s2475_s7 + $0x40] sm:$0xff]  ;;  %v776_v17 = vld [vmem:[%s2475_s7 + $0x48] sm:$0xff] }
  0x46   :  { %525 = vmatmul.mubr.f32.vlgmr.msra.gmra.mrb[2].mxu1 %v1904_v48  ;;  %1464 = vmatprep.subr.bf16.mxu0 %v1463_v27  ;;  %v426_v48 = vld [vmem:[%s2473_s3 + $0x228] sm:$0xff]  ;;  %v1473_v60 = vpack.c.bf16 %v396_v53, %v395_v21  ;;  %v678_v53 = vld [vmem:[%s2474_s5 + $0x30] sm:$0xff]  ;;  %v1560_v18 = vpack.c.bf16 %v776_v17, %v775_v16  ;;  %v874_v17 = vld [vmem:[%s2478_s9 + $0x60] sm:$0xff] }
  0x47   :  { %1494 = vmatpush3.bf16.msra.mxu1 %v1493_v26  ;;  %664 = vmatprep.mubr.f32.mxu1 %v1989_v24  ;;  %v1501_v51 = vpack.c.bf16 %v426_v48, %v425_v42  ;;  %v1503_v24 = vpack.c.bf16 %v444_v47, %v443_v46  ;;  %v401_v26 = vld [vmem:[%s2473_s3 + $0x160] sm:$0xff]  ;;  %v402_v27 = vld [vmem:[%s2473_s3 + $0x168] sm:$0xff]  ;;  %v436_v42 = vld [vmem:[%s2473_s3 + $0x278] sm:$0xff] }
  0x48   :  { %1496 = vmatprep.subr.bf16.mxu1 %v1495_v31  ;;  %v419_v31 = vld [vmem:[%s2473_s3 + $0x1f0] sm:$0xff]  ;;  %v1485_v35 = vpack.c.bf16 %v402_v27, %v401_v26  ;;  %v1521_v48 = vpack.c.bf16 %v436_v42, %v435_v41  ;;  %v673_v46 = vld [vmem:[%s2474_s5 + $0x8] sm:$0xff]  ;;  %v960_v26 = vld [vmem:[%s2476_s2] ss:$0 sm:$0xff] }
  0x49   :  { %1466 = vmatpush3.bf16.msra.mxu0 %v1465_v37  ;;  %v1487_v37 = vpack.c.bf16 %v420_v32, %v419_v31  ;;  %v674_v47 = vld [vmem:[%s2474_s5 + $0x10] sm:$0xff]  ;;  %v961_v41 = vld [vmem:[%s2477_s4] ss:$0 sm:$0xff] }
  0x4a   :  { %1468 = vmatprep.subr.bf16.mxu0 %v1467_v39  ;;  %v404_v39 = vld [vmem:[%s2473_s3 + $0x178] sm:$0xff]  ;;  %v773_v13 = vld [vmem:[%s2475_s7 + $0x30] sm:$0xff] }
  0x4b   :  { %1498 = vmatpush3.bf16.msra.mxu1 %v1497_v38  ;;  %v403_v38 = vld [vmem:[%s2473_s3 + $0x170] sm:$0xff] }
  0x4c   :  { %1500 = vmatprep.subr.bf16.mxu1 %v1499_v43  ;;  %v1489_v43 = vpack.c.bf16 %v404_v39, %v403_v38  ;;  %v777_v19 = vld [vmem:[%s2475_s7 + $0x50] sm:$0xff] }
  0x4d   :  { %1470 = vmatpush3.bf16.msra.mxu0 %v1469_v49 }
  0x4e   :  { %1472 = vmatprep.subr.bf16.mxu0 %v1471_v52  ;;  %v677_v52 = vld [vmem:[%s2474_s5 + $0x28] sm:$0xff] }
  0x4f   :  { %1502 = vmatpush3.bf16.msra.mxu1 %v1501_v51  ;;  %v676_v51 = vld [vmem:[%s2474_s5 + $0x20] sm:$0xff] }
  0x50   :  { %1504 = vmatprep.subr.bf16.mxu1 %v1503_v24  ;;  %v1530_v21 = vpack.c.bf16 %v677_v52, %v676_v51  ;;  %v1533_v24 = vpack.c.bf16 %v679_v54, %v678_v53  ;;  %v780_v53 = vld [vmem:[%s2475_s7 + $0x68] sm:$0xff] }
  0x51   :  { %1474 = vmatpush3.bf16.msra.mxu0 %v1473_v60  ;;  %v1539_v60 = vpack.c.bf16 %v683_v59, %v682_v58  ;;  %v863_v58 = vld [vmem:[%s2478_s9 + $0x8] sm:$0xff]  ;;  %v864_v59 = vld [vmem:[%s2478_s9 + $0x10] sm:$0xff] }
  0x52   :  { %1476 = vmatprep.subr.bf16.mxu0 %v1475_v62  ;;  %v685_v62 = vld [vmem:[%s2474_s5 + $0x68] sm:$0xff] }
  0x53   :  { %1506 = vmatpush3.bf16.msra.mxu1 %v1505_v61  ;;  %v684_v61 = vld [vmem:[%s2474_s5 + $0x60] sm:$0xff] }
  0x54   :  { %1508 = vmatprep.subr.bf16.mxu1 %v1507_v2  ;;  %v1542_v63 = vpack.c.bf16 %v685_v62, %v684_v61  ;;  %v1545_v2 = vpack.c.bf16 %v687_v1, %v686_v0  ;;  %v865_v61 = vld [vmem:[%s2478_s9 + $0x18] sm:$0xff]  ;;  %v867_v0 = vld [vmem:[%s2478_s9 + $0x28] sm:$0xff] }
  0x55   :  { %1478 = vmatpush3.bf16.msra.mxu0 %v1477_v8  ;;  %v770_v8 = vld [vmem:[%s2475_s7 + $0x18] sm:$0xff]  ;;  %v1575_v62 = vpack.c.bf16 %v865_v61, %v864_v59 }
  0x56   :  { %1480 = vmatprep.subr.bf16.mxu0 %v1479_v10  ;;  %v771_v10 = vld [vmem:[%s2475_s7 + $0x20] sm:$0xff] }
  0x57   :  { %1510 = vmatpush3.bf16.msra.mxu1 %v1509_v9  ;;  %v1551_v9 = vpack.c.bf16 %v770_v8, %v769_v6  ;;  %v1554_v12 = vpack.c.bf16 %v772_v11, %v771_v10  ;;  %v871_v6 = vld [vmem:[%s2478_s9 + $0x48] sm:$0xff]  ;;  %v872_v8 = vld [vmem:[%s2478_s9 + $0x50] sm:$0xff]  ;;  %v962_v11 = vld [vmem:[%s2479_s6] ss:$0 sm:$0xff] }
  0x58   :  { %1512 = vmatprep.subr.bf16.mxu1 %v1511_v14  ;;  %v774_v14 = vld [vmem:[%s2475_s7 + $0x38] sm:$0xff] }
  0x59   :  { %1482 = vmatpush3.bf16.msra.mxu0 %v1481_v20  ;;  %v1557_v15 = vpack.c.bf16 %v774_v14, %v773_v13  ;;  %v778_v20 = vld [vmem:[%s2475_s7 + $0x58] sm:$0xff] }
  0x5a   :  { %1484 = vmatprep.subr.bf16.mxu0 %v1483_v25 }
  0x5b   :  { %1514 = vmatpush3.bf16.msra.mxu1 %v1513_v22  ;;  %v1563_v22 = vpack.c.bf16 %v778_v20, %v777_v19  ;;  %v876_v20 = vld [vmem:[%s2478_s9 + $0x70] sm:$0xff] }
  0x5c   :  { %1516 = vmatprep.subr.bf16.mxu1 %v1515_v29 }
  0x5d   :  { %1486 = vmatpush3.bf16.msra.mxu0 %v1485_v35 }
  0x5e   :  { %1488 = vmatprep.subr.bf16.mxu0 %v1487_v37 }
  0x5f   :  { %1518 = vmatpush3.bf16.msra.mxu1 %v1517_v36 }
  0x60   :  { %1520 = vmatprep.subr.bf16.mxu1 %v1519_v40 }
  0x61   :  { %1490 = vmatpush3.bf16.msra.mxu0 %v1489_v43 }
  0x62   :  { %1523 = vmatprep.subr.bf16.mxu0 %v1598_v44 }
  0x63   :  { %1522 = vmatpush3.bf16.msra.mxu1 %v1521_v48 }
  0x64   :  { %595 = vmatmul.mubr.f32.vlgmr.msra.gmra.mrb[4].mxu0 %v1909_v50  ;;  %1547 = vmatprep.subr.bf16.mxu1 %v1598_v44  ;;  %v1524_v50 = vpack.c.bf16 %v673_v46, %v672_v45 }
  0x65   :  { %1258 = vmatprep.mubr.msk.f32.mxu0 %vm1599_vm0, %v1600_v3 }
  0x66   :  { %665 = vmatmul.mubr.f32.vlgmr.msra.gmra.mrb[4].mxu1 %v2115_v23  ;;  %v675_v23 = vld [vmem:[%s2474_s5 + $0x18] sm:$0xff]  ;;  %1525 = vmatpush3.bf16.msra.mxu0 %v1524_v50 }
  0x67   :  { %v1527_v49 = vpack.c.bf16 %v675_v23, %v674_v47  ;;  %1526 = vmatprep.subr.bf16.mxu0 %v1598_v44  ;;  %1293 = vmatprep.mubr.msk.f32.mxu1 %vm1599_vm0, %v1600_v3 }
  0x68   :  { %1549 = vmatpush3.bf16.msra.mxu1 %v1548_v7  ;;  %v1584_v7 = vpack.c.bf16 %v871_v6, %v870_v5 }
  0x69   :  { %1550 = vmatprep.subr.bf16.mxu1 %v1598_v44 }
  0x6a   :  { %1528 = vmatpush3.bf16.msra.mxu0 %v1527_v49 }
  0x6b   :  { %1529 = vmatprep.subr.bf16.mxu0 %v1598_v44 }
  0x6c   :  { %1552 = vmatpush3.bf16.msra.mxu1 %v1551_v9  ;;  %v873_v9 = vld [vmem:[%s2478_s9 + $0x58] sm:$0xff] }
  0x6d   :  { %1553 = vmatprep.subr.bf16.mxu1 %v1598_v44  ;;  %v1587_v10 = vpack.c.bf16 %v873_v9, %v872_v8 }
  0x6e   :  { %1531 = vmatpush3.bf16.msra.mxu0 %v1530_v21  ;;  %v779_v21 = vld [vmem:[%s2475_s7 + $0x60] sm:$0xff] }
  0x6f   :  { %1532 = vmatprep.subr.bf16.mxu0 %v1598_v44  ;;  %v1566_v54 = vpack.c.bf16 %v780_v53, %v779_v21 }
  0x70   :  { %1555 = vmatpush3.bf16.msra.mxu1 %v1554_v12 }
  0x71   :  { %1556 = vmatprep.subr.bf16.mxu1 %v1598_v44 }
  0x72   :  { %1534 = vmatpush3.bf16.msra.mxu0 %v1533_v24  ;;  %v781_v24 = vld [vmem:[%s2475_s7 + $0x70] sm:$0xff] }
  0x73   :  { %1535 = vmatprep.subr.bf16.mxu0 %v1598_v44  ;;  %v1569_v56 = vpack.c.bf16 %v782_v55, %v781_v24 }
  0x74   :  { %1558 = vmatpush3.bf16.msra.mxu1 %v1557_v15 }
  0x75   :  { %1559 = vmatprep.subr.bf16.mxu1 %v1598_v44 }
  0x76   :  { %1537 = vmatpush3.bf16.msra.mxu0 %v1536_v57  ;;  %v862_v57 = vld [vmem:[%s2478_s9] sm:$0xff] }
  0x77   :  { %1538 = vmatprep.subr.bf16.mxu0 %v1598_v44 }
  0x78   :  { %1561 = vmatpush3.bf16.msra.mxu1 %v1560_v18  ;;  %v875_v18 = vld [vmem:[%s2478_s9 + $0x68] sm:$0xff] }
  0x79   :  { %1562 = vmatprep.subr.bf16.mxu1 %v1598_v44  ;;  %v1590_v19 = vpack.c.bf16 %v875_v18, %v874_v17 }
  0x7a   :  { %1540 = vmatpush3.bf16.msra.mxu0 %v1539_v60  ;;  %v1572_v60 = vpack.c.bf16 %v863_v58, %v862_v57 }
  0x7b   :  { %1541 = vmatprep.subr.bf16.mxu0 %v1598_v44 }
  0x7c   :  { %1564 = vmatpush3.bf16.msra.mxu1 %v1563_v22  ;;  %v877_v22 = vld [vmem:[%s2478_s9 + $0x78] sm:$0xff] }
  0x7d   :  { %1565 = vmatprep.subr.bf16.mxu1 %v1598_v44 }
  0x7e   :  { %1543 = vmatpush3.bf16.msra.mxu0 %v1542_v63  ;;  %v866_v63 = vld [vmem:[%s2478_s9 + $0x20] sm:$0xff] }
  0x7f   :  { %1544 = vmatprep.subr.bf16.mxu0 %v1598_v44  ;;  %v1578_v1 = vpack.c.bf16 %v867_v0, %v866_v63 }
  0x80   :  { %1567 = vmatpush3.bf16.msra.mxu1 %v1566_v54 }
  0x81   :  { %1568 = vmatprep.subr.bf16.mxu1 %v1598_v44 }
  0x82   :  { %1546 = vmatpush3.bf16.msra.mxu0 %v1545_v2  ;;  %v868_v2 = vld [vmem:[%s2478_s9 + $0x30] sm:$0xff] }
  0x83   :  { %1571 = vmatprep.subr.bf16.mxu0 %v1598_v44 }
  0x84   :  { %1570 = vmatpush3.bf16.msra.mxu1 %v1569_v56 }
  0xf7   :  { %v997_v25 = vpop.f32.mrb[0].mxu0 }
  0xf8   :  { %v998_v27 = vpop.f32.mrb[1].mxu0 }
  0xf9   :  { %v1032_v28 = vpop.f32.mrb[0].mxu1  ;;  %v999_v29 = vadd.f32 %v998_v27, %v997_v25  ;;  %v1593_v25 = vpack.c.bf16 %v877_v22, %v876_v20 }
  0xfa   :  { %v1033_v30 = vpop.f32.mrb[1].mxu1 }
  0xfb   :  { %v1034_v31 = vadd.f32 %v1033_v30, %v1032_v28  ;;  %v214_v32 = vadd.f32 %v999_v29, %v960_v26  ;;  %v963_v26 = vld [vmem:[%s2480_s8] ss:$0 sm:$0xff] }
  0xfd   :  { %v284_v33 = vadd.f32 %v1034_v31, %v214_v32 }
 0x117   :  { %v1067_v34 = vpop.f32.mrb[2].mxu0 }
 0x118   :  { %v1068_v35 = vpop.f32.mrb[3].mxu0 }
 0x119   :  { %v1102_v36 = vpop.f32.mrb[2].mxu1  ;;  %v1069_v37 = vadd.f32 %v1068_v35, %v1067_v34 }
 0x11a   :  { %v1103_v38 = vpop.f32.mrb[3].mxu1 }
 0x11b   :  { %v1104_v39 = vadd.f32 %v1103_v38, %v1102_v36  ;;  %v354_v40 = vadd.f32 %v1069_v37, %v284_v33 }
 0x11d   :  { %v527_v45 = vadd.f32 %v1104_v39, %v961_v41 }
 0x137   :  { %v1137_v42 = vpop.f32.mrb[4].mxu0 }
 0x138   :  { %v1138_v43 = vpop.f32.mrb[5].mxu0 }
 0x139   :  { %v1172_v48 = vpop.f32.mrb[4].mxu1  ;;  %v1139_v46 = vadd.f32 %v1138_v43, %v1137_v42 }
 0x13a   :  { %v1173_v47 = vpop.f32.mrb[5].mxu1 }
 0x13b   :  { %v1174_v50 = vadd.f32 %v1173_v47, %v1172_v48  ;;  %v597_v23 = vadd.f32 %v1139_v46, %v527_v45 }
 0x13d   :  { %v667_v49 = vadd.f32 %v1174_v50, %v597_v23 }
 0x13f   :  { %v670_v51 = vmax.f32 %v667_v49, 0.0 }
 0x141   :  { %v671_v52 = vadd.f32 %v670_v51, %v354_v40 }
 0x143   :  { %1259 = vmatmul.mubr.f32.vlgmr.msra.gmra.mrb[6].mxu0 %v671_v52 }
 0x144   :  { %1328 = vmatprep.mubr.msk.f32.mxu0 %vm1599_vm0, %v1600_v3  ;;  %1573 = vmatpush3.bf16.msra.mxu0 %v1572_v60  ;;  %v869_v3 = vld [vmem:[%s2478_s9 + $0x38] sm:$0xff] }
 0x145   :  { %1574 = vmatprep.subr.bf16.mxu0 %v1598_v44  ;;  %v1581_v4 = vpack.c.bf16 %v869_v3, %v868_v2 }
 0x148   :  { %1576 = vmatpush3.bf16.msra.mxu0 %v1575_v62 }
 0x149   :  { %1577 = vmatprep.subr.bf16.mxu0 %v1598_v44 }
 0x14c   :  { %1579 = vmatpush3.bf16.msra.mxu0 %v1578_v1 }
 0x14d   :  { %1580 = vmatprep.subr.bf16.mxu0 %v1598_v44 }
 0x150   :  { %1582 = vmatpush3.bf16.msra.mxu0 %v1581_v4 }
 0x151   :  { %1583 = vmatprep.subr.bf16.mxu0 %v1598_v44 }
 0x154   :  { %1585 = vmatpush3.bf16.msra.mxu0 %v1584_v7 }
 0x155   :  { %1586 = vmatprep.subr.bf16.mxu0 %v1598_v44 }
 0x158   :  { %1588 = vmatpush3.bf16.msra.mxu0 %v1587_v10 }
 0x159   :  { %1589 = vmatprep.subr.bf16.mxu0 %v1598_v44 }
 0x15c   :  { %1591 = vmatpush3.bf16.msra.mxu0 %v1590_v19 }
 0x15d   :  { %1592 = vmatprep.subr.bf16.mxu0 %v1598_v44  ;;  %v964_v44 = vld [vmem:[%s2481_s10] ss:$0 sm:$0xff] }
 0x160   :  { %1594 = vmatpush3.bf16.msra.mxu0 %v1593_v25 }
 0x216   :  { %v761_v12 = vpop.f32.mrb[6].mxu0 }
 0x217   :  { %v762_v13 = vadd.f32 %v962_v11, %v761_v12  ;;  %v1260_v14 = vpop.f32.mrb[7].mxu0 }
 0x219   :  { %v765_v15 = vmax.f32 %v762_v13, 0.0 }
 0x21b   :  { %v766_v16 = vadd.f32 %v765_v15, %v671_v52 }
 0x21d   :  { %1294 = vmatmul.mubr.f32.vlgmr.msra.gmra.mrb[6].mxu1 %v766_v16 }
 0x2f0   :  { %v856_v27 = vpop.f32.mrb[6].mxu1 }
 0x2f1   :  { %v857_v28 = vadd.f32 %v963_v26, %v856_v27  ;;  %v1295_v29 = vpop.f32.mrb[7].mxu1 }
 0x2f3   :  { %v860_v30 = vmax.f32 %v857_v28, 0.0 }
 0x2f5   :  { %v861_v31 = vadd.f32 %v860_v30, %v766_v16 }
 0x2f7   :  { %1329 = vmatmul.mubr.f32.vlgmr.msra.gmra.mrb[8].mxu0 %v861_v31 }
 0x3ca   :  { %v951_v32 = vpop.f32.mrb[8].mxu0 }
 0x3cb   :  { %v952_v33 = vadd.f32 %v964_v44, %v951_v32  ;;  %v1330_v34 = vpop.f32.mrb[9].mxu0 }
 0x3cd   :  { %955 = vst [vmem:[%s2482_s11] sm:$0xff] %v952_v33 }

</bundles_post_ra>
